<compile_context>
chip_gen: v7x
topology: tpu7x:2x2x1
jax: 0.10.0
libtpu: 0.0.40
codegen_flags: <defaults>
</compile_context>

<pallas_src>
import functools

import jax
import jax.numpy as jnp
from jax.experimental import pallas as pl
from jax.experimental.pallas import tpu as pltpu


def expert_kernel(x_ref, w1_ref, b1_ref, w2_ref, b2_ref, w3_ref, b3_ref, o_ref):
    # x arrives f32; cast to bf16 on-chip right before the MXU (VPU cast is
    # hidden under the x DMA -> no extra HBM pass for the convert).
    x_bf = x_ref[...].astype(jnp.bfloat16)                         # (TB, D)

    # layer 1: contract the shared D axis directly -- (H1, D) x (TB, D) ->
    # (H1, TB).  No materialized (D, TB) transpose of the batch tile; all
    # intermediates below are lane-dense (features, block_b).
    h1 = jax.lax.dot_general(
        w1_ref[...], x_bf,
        dimension_numbers=(((1,), (1,)), ((), ())),
        preferred_element_type=jnp.float32)                        # (H1, TB) f32
    h1 = jnp.maximum(h1 + b1_ref[...], 0.0)

    # layer 2: (H2, H1) @ (H1, TB) -> (H2, TB), f32 accumulate
    h2 = jnp.dot(w2_ref[...], h1.astype(jnp.bfloat16),
                 preferred_element_type=jnp.float32)
    h2 = jnp.maximum(h2 + b2_ref[...], 0.0)

    # layer 3: (OUT, H2) @ (H2, TB) -> (OUT, TB)
    h3 = jnp.dot(w3_ref[...], h2.astype(jnp.bfloat16),
                 preferred_element_type=jnp.float32)
    h3 = jnp.maximum(h3 + b3_ref[...], 0.0)

    # Dropout(p) in eval mode == identity.
    o_ref[...] = h3.astype(o_ref.dtype)


_MAX_BLOCK_B = 32768  # MiB-scale x tiles (D=32 -> 4 MiB f32 per step)


def _tpu_config():
    """(vmem_budget, vmem_limit, two_cores) derived from the actual chip."""
    vmem_cap = None
    try:
        vmem_cap = int(pltpu.get_tpu_info().vmem_capacity_bytes)
    except Exception:
        vmem_cap = None
    kind = ""
    try:
        kind = jax.devices()[0].device_kind.lower()
    except Exception:
        pass
    if vmem_cap is None:
        vmem_cap = 64 * 1024 * 1024            # v7x-safe conservative default
    # 2 TensorCores share grid steps under dimension_semantics=("parallel",)
    # on v7x (and older megacore parts); v5e / v6e are single-TC.
    two_cores = any(tag in kind for tag in ("v7", "7x", "v4", "v5p"))
    vmem_budget = min(vmem_cap // 2, 64 * 1024 * 1024)       # 32 MiB v7x, 64 MiB v5e/v6e
    vmem_limit = min((vmem_cap * 3) // 4, 96 * 1024 * 1024)  # 48 MiB v7x, 96 MiB v5e/v6e
    return vmem_budget, vmem_limit, two_cores


def _choose_block_b(B, D, out_dim, vmem_budget, two_cores):
    """Batch-tile size.

    Targets: (1) MiB-scale per-step x DMA so the ~0.35 us/step grid overhead
    is amortized, (2) an even step count (>= 2) on 2-TC parts so the parallel
    grid load-balances, (3) fewest steps that fit the VMEM budget on 1-TC
    parts, (4) 128-row alignment (lane-dense output, (8,128)-legal blocks).
    """
    if B <= 512:
        if two_cores and B >= 256 and B % 256 == 0:
            return B // 2          # two balanced, (8,128)-legal tiles
        return B                   # single full-array tile
    # Per-row VMEM bytes: 2x double-buffered f32 x tile + in-kernel bf16 copy
    # + f32 intermediates (16 + 8 + padded OUT rows) + 2x f32 out tile.
    per_row = 10 * D + 96 + 12 * max(8, out_dim)
    cap = max(128, (vmem_budget // per_row) // 128 * 128)
    cap = min(cap, _MAX_BLOCK_B)
    steps = max(2 if two_cores else 1, pl.cdiv(B, cap))
    if two_cores and steps % 2:
        steps += 1                 # even split across the 2 TensorCores
    if steps == 1:
        return B
    return min(cap, pl.cdiv(pl.cdiv(B, steps), 128) * 128)


@functools.partial(jax.jit, static_argnames=("block_b", "return_transposed"))
def expert_forward(x, w1, b1, w2, b2, w3, b3, *, block_b=None,
                   return_transposed=False):
    """x: (B, D) f32.  Weights in PyTorch (out, in) layout, preferably already
    bf16 (see prepare_expert_params); biases (out, 1) f32.  Returns (B, OUT)
    f32, or the kernel-native lane-dense (OUT, B) slab when
    return_transposed=True (cheaper if the downstream MMoE combine consumes it)."""
    B, D = x.shape
    H1, H2, OUT = w1.shape[0], w2.shape[0], w3.shape[0]

    vmem_budget, vmem_limit, two_cores = _tpu_config()
    if block_b is None:
        block_b = _choose_block_b(B, D, OUT, vmem_budget, two_cores)
    block_b = min(block_b, B)
    grid = (pl.cdiv(B, block_b),)

    # bf16 weights for the MXU -- a no-op when pre-cast at init time; biases
    # stay f32 so bias+ReLU run as f32 VPU ops (v5e has no bf16 VPU).
    w1 = w1 if w1.dtype == jnp.bfloat16 else w1.astype(jnp.bfloat16)
    w2 = w2 if w2.dtype == jnp.bfloat16 else w2.astype(jnp.bfloat16)
    w3 = w3 if w3.dtype == jnp.bfloat16 else w3.astype(jnp.bfloat16)

    flops = 2 * B * (D * H1 + H1 * H2 + H2 * OUT)
    bytes_accessed = (B * D * 4 + B * OUT * 4
                      + (D * H1 + H1 * H2 + H2 * OUT) * 2
                      + (H1 + H2 + OUT) * 4)

    out_t = pl.pallas_call(
        expert_kernel,
        out_shape=jax.ShapeDtypeStruct((OUT, B), jnp.float32),
        grid=grid,
        in_specs=[
            # x tile over batch (f32 in HBM; cast to bf16 inside the kernel).
            # TODO(synk): if profiles still show exposed DMA at step boundaries
            # with MiB-scale tiles, add pipeline_mode=pl.Buffered(3) here only.
            pl.BlockSpec((block_b, D), lambda i: (i, 0)),
            pl.BlockSpec((H1, D), lambda i: (0, 0)),        # W1 (VMEM-resident)
            pl.BlockSpec((H1, 1), lambda i: (0, 0)),        # b1
            pl.BlockSpec((H2, H1), lambda i: (0, 0)),       # W2
            pl.BlockSpec((H2, 1), lambda i: (0, 0)),        # b2
            pl.BlockSpec((OUT, H2), lambda i: (0, 0)),      # W3
            pl.BlockSpec((OUT, 1), lambda i: (0, 0)),       # b3
        ],
        out_specs=pl.BlockSpec((OUT, block_b), lambda i: (0, i)),  # lane-dense
        compiler_params=pltpu.CompilerParams(
            dimension_semantics=("parallel",),
            vmem_limit_bytes=vmem_limit,
        ),
        cost_estimate=pl.CostEstimate(
            flops=flops, transcendentals=0, bytes_accessed=bytes_accessed),
    )(x, w1, b1, w2, b2, w3, b3)

    if return_transposed:
        return out_t                 # (OUT, B), kernel-native layout
    return out_t.T                   # (B, OUT), PyTorch layout (OUT is tiny)


def init_expert_params(key, input_dim, output_dim):
    """PyTorch-style init; weights stored as (out_features, in_features) f32."""
    h1, h2 = 16, 8
    ks = jax.random.split(key, 6)

    def lin(kw, kb, fan_in, fan_out):
        bound = 1.0 / jnp.sqrt(fan_in)
        w = jax.random.uniform(kw, (fan_out, fan_in), jnp.float32, -bound, bound)
        b = jax.random.uniform(kb, (fan_out, 1), jnp.float32, -bound, bound)
        return w, b

    w1, b1 = lin(ks[0], ks[1], input_dim, h1)
    w2, b2 = lin(ks[2], ks[3], h1, h2)
    w3, b3 = lin(ks[4], ks[5], h2, output_dim)
    return w1, b1, w2, b2, w3, b3


def prepare_expert_params(params):
    """One-time bf16 cast of the weights (hoisted out of the per-call wrapper
    so repeated MMoE expert calls don't re-issue tiny convert ops); biases f32."""
    w1, b1, w2, b2, w3, b3 = params
    return (w1.astype(jnp.bfloat16), b1,
            w2.astype(jnp.bfloat16), b2,
            w3.astype(jnp.bfloat16), b3)


def expert_reference(x, w1, b1, w2, b2, w3, b3):
    """Pure-JAX reference using the same bf16-input / f32-accumulate math."""
    def lin(h, w, b):
        y = jnp.dot(h.astype(jnp.bfloat16), w.astype(jnp.bfloat16).T,
                    preferred_element_type=jnp.float32) + b.T
        return jnp.maximum(y, 0.0)

    h = lin(x, w1, b1)
    h = lin(h, w2, b2)
    h = lin(h, w3, b3)
    return h


if __name__ == "__main__":
    key = jax.random.PRNGKey(0)
    k_x, k_p = jax.random.split(key)

    batch, input_dim, output_dim = 256, 32, 4
    expert_dropout = 0.1  # eval mode -> identity

    x = jax.random.normal(k_x, (batch, input_dim), dtype=jnp.float32)
    params = prepare_expert_params(init_expert_params(k_p, input_dim, output_dim))

    out = expert_forward(x, *params)
    out = jax.block_until_ready(out)

    ref = expert_reference(x, *params)
    assert out.shape == (batch, output_dim)
    assert jnp.allclose(out, ref, atol=1e-3, rtol=1e-3), "mismatch vs reference"

    print("KERNEL_OK")
</pallas_src>

<mosaic_0001>
module attributes {stable_mosaic.version = 11 : i64} {
  func.func @expert_kernel(%arg0: i32, %arg1: memref<256x32xf32, #tpu.memory_space<vmem>>, %arg2: memref<16x32xbf16, #tpu.memory_space<vmem>>, %arg3: memref<16x1xf32, #tpu.memory_space<vmem>>, %arg4: memref<8x16xbf16, #tpu.memory_space<vmem>>, %arg5: memref<8x1xf32, #tpu.memory_space<vmem>>, %arg6: memref<4x8xbf16, #tpu.memory_space<vmem>>, %arg7: memref<4x1xf32, #tpu.memory_space<vmem>>, %arg8: memref<4x256xf32, #tpu.memory_space<vmem>>) attributes {dimension_semantics = [#tpu.dimension_semantics<parallel>], iteration_bounds = array<i64: 1>, scalar_prefetch = 0 : i64, scratch_operands = 0 : i64, tpu.core_type = #tpu.core_type<tc>, window_params = [{transform_indices = @transform_0, window_bounds = array<i64: 256, 32>}, {pipeline_mode = #tpu.pipeline_mode<synchronous>, transform_indices = @transform_1, window_bounds = array<i64: 16, 32>}, {pipeline_mode = #tpu.pipeline_mode<synchronous>, transform_indices = @transform_2, window_bounds = array<i64: 16, 1>}, {pipeline_mode = #tpu.pipeline_mode<synchronous>, transform_indices = @transform_3, window_bounds = array<i64: 8, 16>}, {pipeline_mode = #tpu.pipeline_mode<synchronous>, transform_indices = @transform_4, window_bounds = array<i64: 8, 1>}, {pipeline_mode = #tpu.pipeline_mode<synchronous>, transform_indices = @transform_5, window_bounds = array<i64: 4, 8>}, {pipeline_mode = #tpu.pipeline_mode<synchronous>, transform_indices = @transform_6, window_bounds = array<i64: 4, 1>}, {transform_indices = @transform_7, window_bounds = array<i64: 4, 256>}]} {
    %c0 = arith.constant 0 : index
    %c0_0 = arith.constant 0 : index
    %0 = vector.load %arg1[%c0, %c0_0] : memref<256x32xf32, #tpu.memory_space<vmem>>, vector<256x32xf32>
    %1 = arith.truncf %0 : vector<256x32xf32> to vector<256x32xbf16>
    %c0_1 = arith.constant 0 : index
    %c0_2 = arith.constant 0 : index
    %2 = vector.load %arg2[%c0_1, %c0_2] : memref<16x32xbf16, #tpu.memory_space<vmem>>, vector<16x32xbf16>
    %cst = arith.constant dense<0.000000e+00> : vector<16x256xf32>
    %3 = tpu.matmul %2, %1, %cst {dimension_numbers = #tpu.dot_dimension_numbers<[1], [1], [0], [0], [0, 0, 1, 0], [], []>} : vector<16x32xbf16>, vector<256x32xbf16>, vector<16x256xf32> -> vector<16x256xf32>
    %c0_3 = arith.constant 0 : index
    %c0_4 = arith.constant 0 : index
    %4 = vector.load %arg3[%c0_3, %c0_4] : memref<16x1xf32, #tpu.memory_space<vmem>>, vector<16x1xf32>
    %5 = vector.broadcast %4 : vector<16x1xf32> to vector<16x256xf32>
    %6 = arith.addf %3, %5 : vector<16x256xf32>
    %cst_5 = arith.constant 0.000000e+00 : f32
    %7 = vector.broadcast %cst_5 : f32 to vector<16x256xf32>
    %8 = arith.maximumf %6, %7 : vector<16x256xf32>
    %c0_6 = arith.constant 0 : index
    %c0_7 = arith.constant 0 : index
    %9 = vector.load %arg4[%c0_6, %c0_7] : memref<8x16xbf16, #tpu.memory_space<vmem>>, vector<8x16xbf16>
    %10 = arith.truncf %8 : vector<16x256xf32> to vector<16x256xbf16>
    %cst_8 = arith.constant dense<0.000000e+00> : vector<8x256xf32>
    %11 = tpu.matmul %9, %10, %cst_8 {dimension_numbers = #tpu.dot_dimension_numbers<[1], [0], [0], [1], [0, 0, 1, 1], [], []>} : vector<8x16xbf16>, vector<16x256xbf16>, vector<8x256xf32> -> vector<8x256xf32>
    %c0_9 = arith.constant 0 : index
    %c0_10 = arith.constant 0 : index
    %12 = vector.load %arg5[%c0_9, %c0_10] : memref<8x1xf32, #tpu.memory_space<vmem>>, vector<8x1xf32>
    %13 = vector.broadcast %12 : vector<8x1xf32> to vector<8x256xf32>
    %14 = arith.addf %11, %13 : vector<8x256xf32>
    %cst_11 = arith.constant 0.000000e+00 : f32
    %15 = vector.broadcast %cst_11 : f32 to vector<8x256xf32>
    %16 = arith.maximumf %14, %15 : vector<8x256xf32>
    %c0_12 = arith.constant 0 : index
    %c0_13 = arith.constant 0 : index
    %17 = vector.load %arg6[%c0_12, %c0_13] : memref<4x8xbf16, #tpu.memory_space<vmem>>, vector<4x8xbf16>
    %18 = arith.truncf %16 : vector<8x256xf32> to vector<8x256xbf16>
    %cst_14 = arith.constant dense<0.000000e+00> : vector<4x256xf32>
    %19 = tpu.matmul %17, %18, %cst_14 {dimension_numbers = #tpu.dot_dimension_numbers<[1], [0], [0], [1], [0, 0, 1, 1], [], []>} : vector<4x8xbf16>, vector<8x256xbf16>, vector<4x256xf32> -> vector<4x256xf32>
    %c0_15 = arith.constant 0 : index
    %c0_16 = arith.constant 0 : index
    %20 = vector.load %arg7[%c0_15, %c0_16] : memref<4x1xf32, #tpu.memory_space<vmem>>, vector<4x1xf32>
    %21 = vector.broadcast %20 : vector<4x1xf32> to vector<4x256xf32>
    %22 = arith.addf %19, %21 : vector<4x256xf32>
    %cst_17 = arith.constant 0.000000e+00 : f32
    %23 = vector.broadcast %cst_17 : f32 to vector<4x256xf32>
    %24 = arith.maximumf %22, %23 : vector<4x256xf32>
    %c0_18 = arith.constant 0 : index
    %c0_19 = arith.constant 0 : index
    %25 = vector.load %arg8[%c0_18, %c0_19] : memref<4x256xf32, #tpu.memory_space<vmem>>, vector<4x256xf32>
    tpu.vector_store %arg8[%c0_18, %c0_19], %24 {strides = array<i32>} : memref<4x256xf32, #tpu.memory_space<vmem>>, vector<4x256xf32>,
    return
  }
  func.func @transform_0(%arg0: i32) -> (i32, i32) {
    %c0_i32 = arith.constant 0 : i32
    %c0_i32_0 = arith.constant 0 : i32
    return %arg0, %c0_i32 : i32, i32
  }
  func.func @transform_1(%arg0: i32) -> (i32, i32) {
    %c0_i32 = arith.constant 0 : i32
    %c0_i32_0 = arith.constant 0 : i32
    %c0_i32_1 = arith.constant 0 : i32
    return %c0_i32, %c0_i32_0 : i32, i32
  }
  func.func @transform_2(%arg0: i32) -> (i32, i32) {
    %c0_i32 = arith.constant 0 : i32
    %c0_i32_0 = arith.constant 0 : i32
    %c0_i32_1 = arith.constant 0 : i32
    return %c0_i32, %c0_i32_0 : i32, i32
  }
  func.func @transform_3(%arg0: i32) -> (i32, i32) {
    %c0_i32 = arith.constant 0 : i32
    %c0_i32_0 = arith.constant 0 : i32
    %c0_i32_1 = arith.constant 0 : i32
    return %c0_i32, %c0_i32_0 : i32, i32
  }
  func.func @transform_4(%arg0: i32) -> (i32, i32) {
    %c0_i32 = arith.constant 0 : i32
    %c0_i32_0 = arith.constant 0 : i32
    %c0_i32_1 = arith.constant 0 : i32
    return %c0_i32, %c0_i32_0 : i32, i32
  }
  func.func @transform_5(%arg0: i32) -> (i32, i32) {
    %c0_i32 = arith.constant 0 : i32
    %c0_i32_0 = arith.constant 0 : i32
    %c0_i32_1 = arith.constant 0 : i32
    return %c0_i32, %c0_i32_0 : i32, i32
  }
  func.func @transform_6(%arg0: i32) -> (i32, i32) {
    %c0_i32 = arith.constant 0 : i32
    %c0_i32_0 = arith.constant 0 : i32
    %c0_i32_1 = arith.constant 0 : i32
    return %c0_i32, %c0_i32_0 : i32, i32
  }
  func.func @transform_7(%arg0: i32) -> (i32, i32) {
    %c0_i32 = arith.constant 0 : i32
    %c0_i32_0 = arith.constant 0 : i32
    return %c0_i32, %arg0 : i32, i32
  }
}

</mosaic_0001>

<bundles_post_ra>
// kernel: expert_forward.1
= control target key start
LH: loop header
LB: loop body
LE: loop exit
PB: predicated region body
PF: predicated region fallthrough
CT: control target
= control target key end

     0   :  { %vm95_vm0 = vcmask 261120   ;;  %v392_v7 = vmov 0   ;;  %s585_s0 = inlined_call_operand.vmem [shape: f32[256,32], index: 0, kind: input, shape index: {}]   ;;  %s586_s1 = inlined_call_operand.vmem [shape: bf16[16,32], index: 1, kind: input, shape index: {}]   ;;  %s587_s2 = inlined_call_operand.vmem [shape: f32[16,1], index: 2, kind: input, shape index: {}]   ;;  %s588_s3 = inlined_call_operand.vmem [shape: bf16[8,16], index: 3, kind: input, shape index: {}]   ;;  %s589_s4 = inlined_call_operand.vmem [shape: f32[8,1], index: 4, kind: input, shape index: {}]   ;;  %s590_s5 = inlined_call_operand.vmem [shape: bf16[4,8], index: 5, kind: input, shape index: {}]   ;;  %s591_s6 = inlined_call_operand.vmem [shape: f32[4,1], index: 6, kind: input, shape index: {}]   ;;  %s592_s7 = inlined_call_operand.hbm [shape: f32[4,256], index: 7, kind: output, shape index: {}]  }
   0x1   :  { %v44_v0 = vld [vmem:[%s585_s0 + $0x80] sm:$0xff]  ;;  %v45_v1 = vld [vmem:[%s585_s0 + $0x88] sm:$0xff]  ;;  %v46_v5 = vld [vmem:[%s585_s0 + $0x90] sm:$0xff]  ;;  %365 = vset.pattern.permute.xlu0 %v392_v7  ;;  %239 = vmatprep.mubr.bf16.mxu1 %v392_v7 }
   0x2   :  { %v28_v2 = vld [vmem:[%s585_s0] sm:$0xff]  ;;  %v68_v3 = vpack.c.bf16 %v45_v1, %v44_v0  ;;  %v29_v4 = vld [vmem:[%s585_s0 + $0x8] sm:$0xff]  ;;  %v47_v6 = vld [vmem:[%s585_s0 + $0x98] sm:$0xff]  ;;  %366 = vset.pattern.permute.xlu1 %v392_v7 }
   0x3   :  { %v60_v8 = vpack.c.bf16 %v29_v4, %v28_v2  ;;  %v69_v9 = vpack.c.bf16 %v47_v6, %v46_v5  ;;  %v30_v10 = vld [vmem:[%s585_s0 + $0x10] sm:$0xff]  ;;  %v31_v11 = vld [vmem:[%s585_s0 + $0x18] sm:$0xff]  ;;  %v48_v14 = vld [vmem:[%s585_s0 + $0xa0] sm:$0xff] }
   0x4   :  { %355 = vmatprep.subr.msk.bf16.mxu0 %vm95_vm0, %v68_v3  ;;  %v61_v13 = vpack.c.bf16 %v31_v11, %v30_v10  ;;  %v49_v15 = vld [vmem:[%s585_s0 + $0xa8] sm:$0xff]  ;;  %v32_v18 = vld [vmem:[%s585_s0 + $0x20] sm:$0xff] }
   0x5   :  { %v100_v12 = vsel %vm95_vm0, %v60_v8, 0  ;;  %v70_v17 = vpack.c.bf16 %v49_v15, %v48_v14  ;;  %v33_v19 = vld [vmem:[%s585_s0 + $0x28] sm:$0xff]  ;;  %v367_v20 = vld [vmem:[%s586_s1] sm:$0xff]  }
   0x6   :  { %338 = vmatpush3.bf16.xpose.msra.mxu0 %v100_v12  ;;  %v103_v16 = vsel %vm95_vm0, %v61_v13, 0  ;;  %v78_v21 = vld [vmem:[%s587_s2] sm:$0xff] }
   0x7   :  { %356 = vmatprep.subr.msk.bf16.mxu0 %vm95_vm0, %v69_v9  ;;  %82 = vperm.xlu0 %365, %v78_v21  }
   0x8   :  { %12 = vsyncpa [#allocation3], 0  ;;  %353 = vmatprep.mubr.msk.bf16.mxu0 %vm95_vm0, %v367_v20  ;;  %v79_v22 = vld [vmem:[%s587_s2 + $0x8] sm:$0xff]  ;;  %v62_v23 = vpack.c.bf16 %v33_v19, %v32_v18  ;;  %v50_v24 = vld [vmem:[%s585_s0 + $0xb0] sm:$0xff]  ;;  %vm203_vm1 = vcmask 130048   ;;  %vm263_vm2 = vcmask 1043456  }
   0x9   :  { %v51_v25 = vld [vmem:[%s585_s0 + $0xb8] sm:$0xff]  ;;  %v34_v28 = vld [vmem:[%s585_s0 + $0x30] sm:$0xff]  ;;  %v52_v31 = vld [vmem:[%s585_s0 + $0xc0] sm:$0xff]  ;;  %vm259_vm3 = vcmask 64512   ;;  %s393_s25 = smov [#allocation2]  }
   0xa   :  { %v106_v26 = vsel %vm95_vm0, %v62_v23, 0  ;;  %v71_v27 = vpack.c.bf16 %v51_v25, %v50_v24  ;;  %v35_v29 = vld [vmem:[%s585_s0 + $0x38] sm:$0xff]  ;;  %v53_v32 = vld [vmem:[%s585_s0 + $0xc8] sm:$0xff]  ;;  %v36_v35 = vld [vmem:[%s585_s0 + $0x40] sm:$0xff]  ;;  %s324_s26 = sshll.u32 %s393_s25, 4  ;;  %s325_s26 = int_to_ptr.vmem [resolvable:$true] %s324_s26 }
   0xb   :  { %87 = vperm.xlu0 %365, %v79_v22   ;;  %v63_v30 = vpack.c.bf16 %v35_v29, %v34_v28  ;;  %v72_v34 = vpack.c.bf16 %v53_v32, %v52_v31  ;;  %v37_v36 = vld [vmem:[%s585_s0 + $0x48] sm:$0xff]  ;;  %v54_v38 = vld [vmem:[%s585_s0 + $0xd0] sm:$0xff]  ;;  %v55_v39 = vld [vmem:[%s585_s0 + $0xd8] sm:$0xff]  ;;  %s368_s27 = scalar_lea.vmem %s325_s26, 128  ;;  %p373_p1 = scmp.lt.s32.totalorder %s325_s26, %s325_s26 }
   0xc   :  { %v64_v37 = vpack.c.bf16 %v37_v36, %v36_v35  ;;  %v73_v41 = vpack.c.bf16 %v55_v39, %v54_v38  ;;  %v38_v42 = vld [vmem:[%s585_s0 + $0x50] sm:$0xff]  ;;  %v39_v43 = vld [vmem:[%s585_s0 + $0x58] sm:$0xff]  ;;  %v56_v45 = vld [vmem:[%s585_s0 + $0xe0] sm:$0xff]  ;;  %p369_p0 = scmp.ne.s32.totalorder %s325_s26, %s368_s27  ;;  %p374_p2 = scmp.lt.s32.totalorder %s368_s27, %s368_s27 }
   0xd   :  { %v109_v33 = vsel %vm95_vm0, %v63_v30, 0  ;;  %v65_v44 = vpack.c.bf16 %v39_v43, %v38_v42  ;;  %v57_v46 = vld [vmem:[%s585_s0 + $0xe8] sm:$0xff]  ;;  %v40_v49 = vld [vmem:[%s585_s0 + $0x60] sm:$0xff]  ;;  %v58_v52 = vld [vmem:[%s585_s0 + $0xf0] sm:$0xff] }
   0xe   :  { %340 = vmatpush3.bf16.xpose.msra.mxu0 %v103_v16  ;;  %v112_v40 = vsel %vm95_vm0, %v64_v37, 0  ;;  %v74_v48 = vpack.c.bf16 %v57_v46, %v56_v45  ;;  %v41_v50 = vld [vmem:[%s585_s0 + $0x68] sm:$0xff]  ;;  %v59_v53 = vld [vmem:[%s585_s0 + $0xf8] sm:$0xff]  ;;  %v42_v56 = vld [vmem:[%s585_s0 + $0x70] sm:$0xff]  ;;  %p375_p3 = por %p374_p2, %p373_p1 }
   0xf   :  { %357 = vmatprep.subr.msk.bf16.mxu0 %vm95_vm0, %v70_v17  ;;  %v115_v47 = vsel %vm95_vm0, %v65_v44, 0  ;;  %v66_v51 = vpack.c.bf16 %v41_v50, %v40_v49  ;;  %v75_v55 = vpack.c.bf16 %v59_v53, %v58_v52  ;;  %v43_v57 = vld [vmem:[%s585_s0 + $0x78] sm:$0xff]  ;;  %v197_v60 = vld [vmem:[%s589_s4] sm:$0xff] }
  0x10   :  { %v67_v58 = vpack.c.bf16 %v43_v57, %v42_v56  ;;  %200 = vperm.xlu1 %366, %v197_v60   ;;  %v253_v61 = vld [vmem:[%s591_s6] sm:$0xf]  ;;  %p376_p4 = pnand %p375_p3, %p369_p0 }
  0x11   :  { %v118_v54 = vsel %vm95_vm0, %v66_v51, 0  ;;  %v194_v15 = vld [vmem:[%s588_s3] sm:$0xf] }
  0x12   :  { %v121_v59 = vsel %vm95_vm0, %v67_v58, 0  ;;  %v250_v28 = vld [vmem:[%s590_s5] sm:$0x3] }
  0x14   :  { %256 = vperm.xlu1 %366, %v253_v61  }
  0x16   :  { %342 = vmatpush3.bf16.xpose.msra.mxu0 %v106_v26 }
  0x17   :  { %358 = vmatprep.subr.msk.bf16.mxu0 %vm95_vm0, %v71_v27 }
  0x1e   :  { %344 = vmatpush3.bf16.xpose.msra.mxu0 %v109_v33 }
  0x1f   :  { %359 = vmatprep.subr.msk.bf16.mxu0 %vm95_vm0, %v72_v34 }
  0x26   :  { %346 = vmatpush3.bf16.xpose.msra.mxu0 %v112_v40 }
  0x27   :  { %360 = vmatprep.subr.msk.bf16.mxu0 %vm95_vm0, %v73_v41 }
  0x2e   :  { %348 = vmatpush3.bf16.xpose.msra.mxu0 %v115_v47 }
  0x2f   :  { %361 = vmatprep.subr.msk.bf16.mxu0 %vm95_vm0, %v74_v48 }
  0x36   :  { %350 = vmatpush3.bf16.xpose.msra.mxu0 %v118_v54 }
  0x37   :  { %362 = vmatprep.subr.msk.bf16.mxu0 %vm95_vm0, %v75_v55 }
  0x3e   :  { %352 = vmatpush3.bf16.xpose.msra.mxu0 %v121_v59 }
  0x45   :  { %354 = vmatmul.mubr.msk.bf16.vlgmr.msra.gmra.mrb[0].mxu0 %vm95_vm0, %v367_v20 }
  0x86   :  { %v83_v62 = vpop.permute.xlu0 %82 }
  0x8a   :  { %v88_v2 = vpop.permute.xlu0 %87 }
  0x8f   :  { %v201_v16 = vpop.permute.xlu1 %200 }
 0x118   :  { %v181_v63 = vpop.f32.mrb[0].mxu0 }
 0x119   :  { %v182_v0 = vadd.f32 %v181_v63, %v83_v62  ;;  %v183_v1 = vpop.f32.mrb[1].mxu0 }
 0x11a   :  { %v184_v3 = vadd.f32 %v183_v1, %v83_v62  ;;  %v185_v4 = vpop.f32.mrb[2].mxu0 }
 0x11b   :  { %v186_v5 = vadd.f32 %v185_v4, %v88_v2  ;;  %v187_v6 = vpop.f32.mrb[3].mxu0  ;;  %v190_v9 = vmax.f32 %v182_v0, 0.0 }
 0x11c   :  { %v188_v8 = vadd.f32 %v187_v6, %v88_v2  ;;  %v191_v11 = vmax.f32 %v184_v3, 0.0 }
 0x11d   :  { %v192_v10 = vmax.f32 %v186_v5, 0.0 }
 0x11e   :  { %v193_v12 = vmax.f32 %v188_v8, 0.0 }
 0x11f   :  { %v195_v13 = vpack.c.bf16 %v192_v10, %v190_v9 }
 0x120   :  { %v196_v14 = vpack.c.bf16 %v193_v12, %v191_v11 }
 0x122   :  { %207 = vmatprep.subr.bf16.mxu1 %v196_v14 }
 0x123   :  { %208 = vmatpush1.bf16.msra.mxu1 %v195_v13 }
 0x126   :  { %334 = vmatmul.mubr.msk.bf16.vlgmr.msra.gmra.mrb[0].mxu1 %vm203_vm1, %v194_v15 }
 0x127   :  { %302 = vmatprep.mubr.bf16.mxu1 %v392_v7  ;;  %v257_v7 = vpop.permute.xlu1 %256 }
 0x1f9   :  { %v241_v17 = vpop.f32.mrb[0].mxu1 }
 0x1fa   :  { %v242_v18 = vadd.f32 %v241_v17, %v201_v16  ;;  %v243_v19 = vpop.f32.mrb[1].mxu1 }
 0x1fb   :  { %v244_v20 = vadd.f32 %v243_v19, %v201_v16  ;;  %v245_v21 = vpop.f32.mrb[2].mxu1 }
 0x1fc   :  { %v248_v22 = vmax.f32 %v242_v18, 0.0  ;;  %v246_v23 = vpop.f32.mrb[3].mxu1 }
 0x1fd   :  { %v249_v24 = vmax.f32 %v244_v20, 0.0 }
 0x1fe   :  { %v251_v25 = vpack.c.bf16 %v248_v22, %v248_v22 }
 0x1ff   :  { %v252_v26 = vpack.c.bf16 %v249_v24, %v249_v24 }
 0x200   :  { %v265_v27 = vsel %vm263_vm2, %v251_v25, 0 }
 0x201   :  { %335 = vmatprep.subr.msk.bf16.mxu1 %vm263_vm2, %v252_v26 }
 0x202   :  { %271 = vmatpush1.bf16.msra.mxu1 %v265_v27 }
 0x205   :  { %336 = vmatmul.mubr.msk.bf16.vlgmr.msra.gmra.mrb[4].mxu1 %vm259_vm3, %v250_v28 }
 0x2d8   :  { %v304_v29 = vpop.f32.mrb[4].mxu1 }
 0x2d9   :  { %v305_v30 = vadd.f32 %v304_v29, %v257_v7  ;;  %v306_v31 = vpop.f32.mrb[5].mxu1 }
 0x2da   :  { %v307_v32 = vadd.f32 %v306_v31, %v257_v7  ;;  %v308_v33 = vpop.f32.mrb[6].mxu1 }
 0x2db   :  { %v311_v34 = vmax.f32 %v305_v30, 0.0  ;;  %v309_v35 = vpop.f32.mrb[7].mxu1 }
 0x2dc   :  { %v312_v36 = vmax.f32 %v307_v32, 0.0 }
 0x2de   :  { %v315_v37 = vcombine.low %v311_v34, %v312_v36 }
 0x2e0   :  { %317 = vst [vmem:[#allocation2] sm:$0xff] %v315_v37 }
 0x2e1   :  { %379 = shalt.err (!%p376_p4)
}
 0x2e2   :  { %s380_s29 = scalar_lea.hbm %s592_s7, 128 }
 0x2e3   :  { %p381_p5 = scmp.ne.s32.totalorder %s592_s7, %s380_s29  ;;  %p384_p6 = scmp.lt.u32.totalorder %s380_s29, %s592_s7 }
 0x2e5   :  { %p386_p7 = pnand %p384_p6, %p381_p5 }
 0x2e7   :  { %389 = shalt.err (!%p386_p7)
}
 0x2e8   :  { %327 = dma.vmem_to_hbm [thread:$0]  %s325_s26, 128, %s592_s7, [#allocation3]  }
 0x2e9   :  { %390 = dma.done.wait [#allocation3], 128  }
 0x2ea   :  { %391 = vsyncadd [#allocation3], 4294967168 }
 0x2eb   :  { %331 = vsyncpa [#allocation3], 1 }

</bundles_post_ra>
